<compile_context>
chip_gen: v5e
topology: v5e:2x2
jax: 0.10.0
libtpu: 0.0.40
codegen_flags: <defaults>
</compile_context>

<pallas_src>
import functools

import jax
import jax.numpy as jnp
from jax.experimental import pallas as pl
from jax.experimental.pallas import tpu as pltpu


NODE_SIZE = 64            # GraphNetConfig.node_size
HG_SIZE = NODE_SIZE * 2   # hG_multiplier = 2
NUM_CAT = 10              # Surround_Node.number (synthetic)
LANE = 128


def addnode_kernel(x_ref, seg_ref, wfg_ref, bfg_ref, wd_ref, bd_ref, o_ref,
                   *, hg_size):
    x = x_ref[...]                                                   # (rows, node_size)

    # Fused f_m | g_m projection: one 2*hG-wide MXU matmul.
    fg = jnp.dot(x, wfg_ref[...], preferred_element_type=jnp.float32) + bfg_ref[...]
    f = fg[:, :hg_size]                      # static, lane-tile-aligned slices
    g = fg[:, hg_size:]
    weighted = f * jax.nn.sigmoid(g)         # sigmoid -> EUP slot, mul -> VPU

    # Per-graph masked node sum on the MXU: seg[g, r] = 1 iff row r is a valid
    # node of graph g (block-diagonal, built host-side; padded/empty rows -> 0,
    # which also kills the bias contribution of padded rows).
    h_g = jnp.dot(seg_ref[...], weighted, preferred_element_type=jnp.float32)

    # Decision head, lane-dense (num_cat padded to 128 -> unmasked vst).
    out = jnp.dot(h_g, wd_ref[...], preferred_element_type=jnp.float32) + bd_ref[...]
    o_ref[...] = out.astype(o_ref.dtype)


def add_node_forward(x, n_nodes, wf, bf, wg, bg, wd, bd, *, graphs_per_step=None):
    """Batched AddNode forward.

    x:       (B, N_max, node_size) padded node vectors, one graph per row.
    n_nodes: (B,) int32 number of valid nodes per graph (0 allowed).
    wf/bf:   Aggregator.f_m weight (node_size, hG) [pre-transposed], bias (1, hG).
    wg/bg:   Aggregator.g_m weight (node_size, hG), bias (1, hG).
    wd/bd:   AddNode.f_add_node weight (hG, num_cat), bias (1, num_cat).
    Returns  (B, num_cat) logits.
    """
    B, n_max, node_size = x.shape
    hg_size = wf.shape[1]
    num_cat = wd.shape[1]

    # ---- host-side packing -------------------------------------------------
    # Fuse f_m | g_m into one (node_size, 2*hG) weight / (1, 2*hG) bias.
    w_fg = jnp.concatenate([wf, wg], axis=1)
    b_fg = jnp.concatenate([bf, bg], axis=1)

    # Lane-dense decision head: pad num_cat up to a multiple of 128.
    cat_pad = LANE * pl.cdiv(num_cat, LANE)
    wd_pad = jnp.zeros((hg_size, cat_pad), wd.dtype).at[:, :num_cat].set(wd)
    bd_pad = jnp.zeros((1, cat_pad), bd.dtype).at[:, :num_cat].set(bd)

    # Graph-block size: multiple of 8 (sublane), targeting ~512 node rows per
    # grid step, without over-padding small batches.
    if graphs_per_step is None:
        graphs_per_step = max(8, 8 * (512 // (8 * n_max)))
        graphs_per_step = min(graphs_per_step, 8 * pl.cdiv(B, 8))

    # Pad batch to a multiple of graphs_per_step; padded graphs get 0 nodes.
    b_pad = graphs_per_step * pl.cdiv(B, graphs_per_step)
    x_p = jnp.zeros((b_pad, n_max, node_size), x.dtype).at[:B].set(x)
    n_p = jnp.zeros((b_pad,), jnp.int32).at[:B].set(n_nodes.astype(jnp.int32))
    x_flat = x_p.reshape(b_pad * n_max, node_size)

    rows_per_step = graphs_per_step * n_max

    # Block-diagonal segment matrix with the valid-node mask folded in:
    #   seg_all[g, c] = 1  iff column c (within g's grid block) is node j of
    #   graph g and j < n_nodes[g].  Empty graphs -> all-zero row -> h_G = 0.
    within = (jnp.arange(b_pad, dtype=jnp.int32) % graphs_per_step)[:, None]
    col = jnp.arange(rows_per_step, dtype=jnp.int32)[None, :]
    node_j = col - within * n_max
    valid = jnp.minimum(n_p[:, None], jnp.int32(n_max))
    seg_all = ((node_j >= 0) & (node_j < valid)).astype(x.dtype)      # (b_pad, rows)

    grid = (b_pad // graphs_per_step,)
    kernel = functools.partial(addnode_kernel, hg_size=hg_size)

    out_padded = pl.pallas_call(
        kernel,
        out_shape=jax.ShapeDtypeStruct((b_pad, cat_pad), jnp.float32),
        grid_spec=pltpu.PrefetchScalarGridSpec(
            num_scalar_prefetch=0,
            grid=grid,
            in_specs=[
                pl.BlockSpec((rows_per_step, node_size), lambda i: (i, 0)),
                pl.BlockSpec((graphs_per_step, rows_per_step), lambda i: (i, 0)),
                # Weights / biases: constant index_map -> DMA'd once, VMEM-resident.
                pl.BlockSpec((node_size, 2 * hg_size), lambda i: (0, 0)),
                pl.BlockSpec((1, 2 * hg_size), lambda i: (0, 0)),
                pl.BlockSpec((hg_size, cat_pad), lambda i: (0, 0)),
                pl.BlockSpec((1, cat_pad), lambda i: (0, 0)),
            ],
            out_specs=pl.BlockSpec((graphs_per_step, cat_pad), lambda i: (i, 0)),
        ),
        compiler_params=pltpu.CompilerParams(
            dimension_semantics=("parallel",)),
    )(x_flat, seg_all, w_fg, b_fg, wd_pad, bd_pad)

    return out_padded[:B, :num_cat]


def _torch_linear_init(key, in_size, out_size):
    """PyTorch nn.Linear default init: U(-1/sqrt(in), 1/sqrt(in)); weight pre-transposed."""
    kw, kb = jax.random.split(key)
    bound = 1.0 / jnp.sqrt(jnp.float32(in_size))
    w = jax.random.uniform(kw, (in_size, out_size), jnp.float32, -bound, bound)
    b = jax.random.uniform(kb, (1, out_size), jnp.float32, -bound, bound)
    return w, b


def _reference(x, n_nodes, wf, bf, wg, bg, wd, bd):
    B, n_max, node_size = x.shape
    xf = x.reshape(B * n_max, node_size)
    f = xf @ wf + bf
    g = jax.nn.sigmoid(xf @ wg + bg)
    mask = (jnp.arange(n_max)[None, :] < n_nodes[:, None]).astype(x.dtype)
    h = (f * g).reshape(B, n_max, -1) * mask[:, :, None]
    h_g = h.sum(axis=1)
    return h_g @ wd + bd


if __name__ == "__main__":
    n_max = 8        # max nodes per (padded) graph
    n_graphs = 12    # batch of graphs (not a multiple of 8 -> exercises batch padding)

    key = jax.random.PRNGKey(0)
    kx, kf, kg, kd = jax.random.split(key, 4)

    x = jax.random.normal(kx, (n_graphs, n_max, NODE_SIZE), jnp.float32)
    n_nodes = jnp.array([8, 5, 3, 0, 7, 8, 1, 2, 6, 4, 8, 0], jnp.int32)

    wf, bf = _torch_linear_init(kf, NODE_SIZE, HG_SIZE)   # Aggregator.f_m
    wg, bg = _torch_linear_init(kg, NODE_SIZE, HG_SIZE)   # Aggregator.g_m (pre-sigmoid)
    wd, bd = _torch_linear_init(kd, HG_SIZE, NUM_CAT)     # AddNode.f_add_node

    out = add_node_forward(x, n_nodes, wf, bf, wg, bg, wd, bd)
    out = jax.block_until_ready(out)

    ref = _reference(x, n_nodes, wf, bf, wg, bg, wd, bd)
    assert out.shape == (n_graphs, NUM_CAT)
    assert jnp.allclose(out, ref, atol=1e-4, rtol=1e-4), "mismatch vs reference"
    # Empty graph (n_nodes == 0) must reduce to the decision-head bias.
    assert jnp.allclose(out[3], bd[0, :NUM_CAT], atol=1e-5), "empty-graph branch wrong"

    print("KERNEL_OK")
</pallas_src>

<mosaic_0001>
module attributes {stable_mosaic.version = 11 : i64} {
  func.func @addnode_kernel(%arg0: i32, %arg1: memref<128x64xf32, #tpu.memory_space<vmem>>, %arg2: memref<16x128xf32, #tpu.memory_space<vmem>>, %arg3: memref<64x256xf32, #tpu.memory_space<vmem>>, %arg4: memref<1x256xf32, #tpu.memory_space<vmem>>, %arg5: memref<128x128xf32, #tpu.memory_space<vmem>>, %arg6: memref<1x128xf32, #tpu.memory_space<vmem>>, %arg7: memref<16x128xf32, #tpu.memory_space<vmem>>) attributes {dimension_semantics = [#tpu.dimension_semantics<parallel>], iteration_bounds = array<i64: 1>, scalar_prefetch = 0 : i64, scratch_operands = 0 : i64, tpu.core_type = #tpu.core_type<tc>, window_params = [{transform_indices = @transform_0, window_bounds = array<i64: 128, 64>}, {transform_indices = @transform_1, window_bounds = array<i64: 16, 128>}, {pipeline_mode = #tpu.pipeline_mode<synchronous>, transform_indices = @transform_2, window_bounds = array<i64: 64, 256>}, {pipeline_mode = #tpu.pipeline_mode<synchronous>, transform_indices = @transform_3, window_bounds = array<i64: 1, 256>}, {pipeline_mode = #tpu.pipeline_mode<synchronous>, transform_indices = @transform_4, window_bounds = array<i64: 128, 128>}, {pipeline_mode = #tpu.pipeline_mode<synchronous>, transform_indices = @transform_5, window_bounds = array<i64: 1, 128>}, {transform_indices = @transform_6, window_bounds = array<i64: 16, 128>}]} {
    %c0 = arith.constant 0 : index
    %c0_0 = arith.constant 0 : index
    %0 = vector.load %arg1[%c0, %c0_0] : memref<128x64xf32, #tpu.memory_space<vmem>>, vector<128x64xf32>
    %c0_1 = arith.constant 0 : index
    %c0_2 = arith.constant 0 : index
    %1 = vector.load %arg3[%c0_1, %c0_2] : memref<64x256xf32, #tpu.memory_space<vmem>>, vector<64x256xf32>
    %cst = arith.constant dense<0.000000e+00> : vector<128x256xf32>
    %2 = tpu.matmul %0, %1, %cst {dimension_numbers = #tpu.dot_dimension_numbers<[1], [0], [0], [1], [0, 0, 1, 1], [], []>} : vector<128x64xf32>, vector<64x256xf32>, vector<128x256xf32> -> vector<128x256xf32>
    %c0_3 = arith.constant 0 : index
    %c0_4 = arith.constant 0 : index
    %3 = vector.load %arg4[%c0_3, %c0_4] : memref<1x256xf32, #tpu.memory_space<vmem>>, vector<1x256xf32>
    %4 = vector.broadcast %3 : vector<1x256xf32> to vector<128x256xf32>
    %5 = arith.addf %2, %4 : vector<128x256xf32>
    %6 = vector.extract_strided_slice %5 {offsets = [0, 0], sizes = [128, 128], strides = [1, 1]} : vector<128x256xf32> to vector<128x128xf32>
    %7 = vector.extract_strided_slice %5 {offsets = [0, 128], sizes = [128, 128], strides = [1, 1]} : vector<128x256xf32> to vector<128x128xf32>
    %8 = arith.negf %7 : vector<128x128xf32>
    %9 = math.exp %8 : vector<128x128xf32>
    %cst_5 = arith.constant 1.000000e+00 : f32
    %10 = vector.broadcast %cst_5 : f32 to vector<128x128xf32>
    %11 = arith.addf %10, %9 : vector<128x128xf32>
    %12 = arith.divf %10, %11 : vector<128x128xf32>
    %13 = arith.mulf %6, %12 : vector<128x128xf32>
    %c0_6 = arith.constant 0 : index
    %c0_7 = arith.constant 0 : index
    %14 = vector.load %arg2[%c0_6, %c0_7] : memref<16x128xf32, #tpu.memory_space<vmem>>, vector<16x128xf32>
    %cst_8 = arith.constant dense<0.000000e+00> : vector<16x128xf32>
    %15 = tpu.matmul %14, %13, %cst_8 {dimension_numbers = #tpu.dot_dimension_numbers<[1], [0], [0], [1], [0, 0, 1, 1], [], []>} : vector<16x128xf32>, vector<128x128xf32>, vector<16x128xf32> -> vector<16x128xf32>
    %c0_9 = arith.constant 0 : index
    %c0_10 = arith.constant 0 : index
    %16 = vector.load %arg5[%c0_9, %c0_10] : memref<128x128xf32, #tpu.memory_space<vmem>>, vector<128x128xf32>
    %cst_11 = arith.constant dense<0.000000e+00> : vector<16x128xf32>
    %17 = tpu.matmul %15, %16, %cst_11 {dimension_numbers = #tpu.dot_dimension_numbers<[1], [0], [0], [1], [0, 0, 1, 1], [], []>} : vector<16x128xf32>, vector<128x128xf32>, vector<16x128xf32> -> vector<16x128xf32>
    %c0_12 = arith.constant 0 : index
    %c0_13 = arith.constant 0 : index
    %18 = vector.load %arg6[%c0_12, %c0_13] : memref<1x128xf32, #tpu.memory_space<vmem>>, vector<1x128xf32>
    %19 = vector.broadcast %18 : vector<1x128xf32> to vector<16x128xf32>
    %20 = arith.addf %17, %19 : vector<16x128xf32>
    %c0_14 = arith.constant 0 : index
    %c0_15 = arith.constant 0 : index
    %21 = vector.load %arg7[%c0_14, %c0_15] : memref<16x128xf32, #tpu.memory_space<vmem>>, vector<16x128xf32>
    tpu.vector_store %arg7[%c0_14, %c0_15], %20 {strides = array<i32>} : memref<16x128xf32, #tpu.memory_space<vmem>>, vector<16x128xf32>,
    return
  }
  func.func @transform_0(%arg0: i32) -> (i32, i32) {
    %c0_i32 = arith.constant 0 : i32
    %c0_i32_0 = arith.constant 0 : i32
    return %arg0, %c0_i32 : i32, i32
  }
  func.func @transform_1(%arg0: i32) -> (i32, i32) {
    %c0_i32 = arith.constant 0 : i32
    %c0_i32_0 = arith.constant 0 : i32
    return %arg0, %c0_i32 : i32, i32
  }
  func.func @transform_2(%arg0: i32) -> (i32, i32) {
    %c0_i32 = arith.constant 0 : i32
    %c0_i32_0 = arith.constant 0 : i32
    %c0_i32_1 = arith.constant 0 : i32
    return %c0_i32, %c0_i32_0 : i32, i32
  }
  func.func @transform_3(%arg0: i32) -> (i32, i32) {
    %c0_i32 = arith.constant 0 : i32
    %c0_i32_0 = arith.constant 0 : i32
    %c0_i32_1 = arith.constant 0 : i32
    return %c0_i32, %c0_i32_0 : i32, i32
  }
  func.func @transform_4(%arg0: i32) -> (i32, i32) {
    %c0_i32 = arith.constant 0 : i32
    %c0_i32_0 = arith.constant 0 : i32
    %c0_i32_1 = arith.constant 0 : i32
    return %c0_i32, %c0_i32_0 : i32, i32
  }
  func.func @transform_5(%arg0: i32) -> (i32, i32) {
    %c0_i32 = arith.constant 0 : i32
    %c0_i32_0 = arith.constant 0 : i32
    %c0_i32_1 = arith.constant 0 : i32
    return %c0_i32, %c0_i32_0 : i32, i32
  }
  func.func @transform_6(%arg0: i32) -> (i32, i32) {
    %c0_i32 = arith.constant 0 : i32
    %c0_i32_0 = arith.constant 0 : i32
    return %arg0, %c0_i32 : i32, i32
  }
}

</mosaic_0001>

<bundles_post_ra>
// kernel: tpu_custom_call.1
= control target key start
LH: loop header
LB: loop body
LE: loop exit
PB: predicated region body
PF: predicated region fallthrough
CT: control target
= control target key end

     0   :  { %11 = vsyncpa [#allocation3], 0  ;;  %s1598_s0 = inlined_call_operand.vmem [shape: f32[128,64], index: 0, kind: input, shape index: {}]   ;;  %s1599_s1 = inlined_call_operand.vmem [shape: f32[16,128], index: 1, kind: input, shape index: {}]   ;;  %s1600_s2 = inlined_call_operand.vmem [shape: f32[64,256], index: 2, kind: input, shape index: {}]   ;;  %s1601_s3 = inlined_call_operand.vmem [shape: f32[1,256], index: 3, kind: input, shape index: {}]   ;;  %s1602_s4 = inlined_call_operand.hbm [shape: f32[128,128], index: 4, kind: input, shape index: {}]   ;;  %s1603_s5 = inlined_call_operand.vmem [shape: f32[1,128], index: 5, kind: input, shape index: {}]   ;;  %s1604_s6 = inlined_call_operand.hbm [shape: f32[16,128], index: 6, kind: output, shape index: {}]  }
   0x1   :  { %12 = vsyncpa [#allocation4], 0  ;;  %s25_s23 = sshll.u32 %s1602_s4, 4  ;;  %s851_s24 = smov [#allocation2]   ;;  %s26_s23 = int_to_ptr.hbm [resolvable:$true] %s25_s23 }
   0x2   :  { %s27_s25 = sshll.u32 %s851_s24, 4  ;;  %s852_s26 = smov 128   ;;  %s28_s25 = int_to_ptr.vmem [resolvable:$true] %s27_s25 }
   0x3   :  { %s853_s27 = smov 8  }
   0x4   :  { %33 = dma.hbm_to_vmem [thread:$0]  %s26_s23, 2048, %s28_s25, [#allocation3], %s852_s26, %s852_s26, %s853_s27  }
   0x5   :  { %847 = dma.done.wait [#allocation3], 2048  }
   0x6   :  { %848 = vsyncadd [#allocation3], 4294965248  ;;  %v70_v0 = vld [vmem:[%s1600_s2 + $0x70] sm:$0xff]  ;;  %v71_v1 = vld [vmem:[%s1600_s2 + $0x78] sm:$0xff]  ;;  %vm78_vm0 = vcmask 523264   ;;  %s854_s25 = smov [#allocation5]  }
   0x7   :  { %v68_v2 = vld [vmem:[%s1600_s2 + $0x60] sm:$0xff]  ;;  %135 = vmatpush.msra.mxu0 %v70_v0  ;;  %200 = vmatpush.msra.mxu1 %v71_v1  ;;  %v69_v3 = vld [vmem:[%s1600_s2 + $0x68] sm:$0xff]  ;;  %v66_v4 = vld [vmem:[%s1600_s2 + $0x50] sm:$0xff]  ;;  %s651_s28 = sshll.u32 %s854_s25, 4  ;;  %s652_s28 = int_to_ptr.vmem [resolvable:$true] %s651_s28 }
   0x8   :  { %722 = vmatpush.msra.mxu3 %v71_v1  ;;  %v67_v5 = vld [vmem:[%s1600_s2 + $0x58] sm:$0xff]  ;;  %714 = vmatpush.msra.mxu2 %v70_v0  ;;  %v64_v6 = vld [vmem:[%s1600_s2 + $0x40] sm:$0xff]  ;;  %v65_v7 = vld [vmem:[%s1600_s2 + $0x48] sm:$0xff] }
   0x9   :  { %136 = vmatpush.msra.mxu0 %v68_v2  ;;  %201 = vmatpush.msra.mxu1 %v69_v3  ;;  %v62_v8 = vld [vmem:[%s1600_s2 + $0x30] sm:$0xff]  ;;  %v63_v9 = vld [vmem:[%s1600_s2 + $0x38] sm:$0xff]  ;;  %v60_v10 = vld [vmem:[%s1600_s2 + $0x20] sm:$0xff] }
   0xa   :  { %723 = vmatpush.msra.mxu3 %v69_v3  ;;  %715 = vmatpush.msra.mxu2 %v68_v2  ;;  %v61_v11 = vld [vmem:[%s1600_s2 + $0x28] sm:$0xff]  ;;  %v58_v12 = vld [vmem:[%s1600_s2 + $0x10] sm:$0xff]  ;;  %v59_v13 = vld [vmem:[%s1600_s2 + $0x18] sm:$0xff] }
   0xb   :  { %137 = vmatpush.msra.mxu0 %v66_v4  ;;  %202 = vmatpush.msra.mxu1 %v67_v5  ;;  %v56_v14 = vld [vmem:[%s1600_s2] sm:$0xff]  ;;  %v57_v15 = vld [vmem:[%s1600_s2 + $0x8] sm:$0xff]  ;;  %v50_v18 = vld [vmem:[%s1598_s0 + $0x50] sm:$0xff] }
   0xc   :  { %724 = vmatpush.msra.mxu3 %v67_v5  ;;  %716 = vmatpush.msra.mxu2 %v66_v4  ;;  %v40_v16 = vld [vmem:[%s1598_s0] sm:$0xff]  ;;  %v49_v17 = vld [vmem:[%s1598_s0 + $0x48] sm:$0xff]  ;;  %v51_v20 = vld [vmem:[%s1598_s0 + $0x58] sm:$0xff] }
   0xd   :  { %138 = vmatpush.msra.mxu0 %v64_v6  ;;  %203 = vmatpush.msra.mxu1 %v65_v7  ;;  %v41_v19 = vld [vmem:[%s1598_s0 + $0x8] sm:$0xff]  ;;  %v42_v21 = vld [vmem:[%s1598_s0 + $0x10] sm:$0xff]  ;;  %v52_v22 = vld [vmem:[%s1598_s0 + $0x60] sm:$0xff] }
   0xe   :  { %725 = vmatpush.msra.mxu3 %v65_v7  ;;  %717 = vmatpush.msra.mxu2 %v64_v6  ;;  %v43_v23 = vld [vmem:[%s1598_s0 + $0x18] sm:$0xff]  ;;  %v53_v24 = vld [vmem:[%s1598_s0 + $0x68] sm:$0xff]  ;;  %v44_v25 = vld [vmem:[%s1598_s0 + $0x20] sm:$0xff] }
   0xf   :  { %139 = vmatpush.msra.mxu0 %v62_v8  ;;  %204 = vmatpush.msra.mxu1 %v63_v9  ;;  %v54_v26 = vld [vmem:[%s1598_s0 + $0x70] sm:$0xff]  ;;  %v45_v27 = vld [vmem:[%s1598_s0 + $0x28] sm:$0xff]  ;;  %v55_v28 = vld [vmem:[%s1598_s0 + $0x78] sm:$0xff] }
  0x10   :  { %726 = vmatpush.msra.mxu3 %v63_v9  ;;  %718 = vmatpush.msra.mxu2 %v62_v8  ;;  %v46_v29 = vld [vmem:[%s1598_s0 + $0x30] sm:$0xff]  ;;  %v47_v30 = vld [vmem:[%s1598_s0 + $0x38] sm:$0xff]  ;;  %v48_v31 = vld [vmem:[%s1598_s0 + $0x40] sm:$0xff] }
  0x11   :  { %140 = vmatpush.msra.mxu0 %v60_v10  ;;  %205 = vmatpush.msra.mxu1 %v61_v11  ;;  %v72_v34 = vld [vmem:[%s1601_s3] sm:$0x3] }
  0x12   :  { %727 = vmatpush.msra.mxu3 %v61_v11  ;;  %719 = vmatpush.msra.mxu2 %v60_v10  ;;  %v1029_v36 = vperm.slane %v72_v34, 1 }
  0x13   :  { %141 = vmatpush.msra.mxu0 %v58_v12  ;;  %206 = vmatpush.msra.mxu1 %v59_v13 }
  0x14   :  { %728 = vmatpush.msra.mxu3 %v59_v13  ;;  %720 = vmatpush.msra.mxu2 %v58_v12 }
  0x15   :  { %142 = vmatpush.msra.mxu0 %v56_v14  ;;  %207 = vmatpush.msra.mxu1 %v57_v15 }
  0x16   :  { %729 = vmatpush.msra.mxu3 %v57_v15  ;;  %666 = vmatmul.msk.f32.vlgmr.msra.gmra.mxu0 %vm78_vm0, %v40_v16 }
  0x17   :  { %682 = vmatmul.msk.f32.vlgmr.msra.gmra.mxu1 %vm78_vm0, %v40_v16  ;;  %691 = vmatmul.msk.f32.vlgmr.msra.gmra.mxu3 %vm78_vm0, %v49_v17 }
  0x18   :  { %721 = vmatpush.msra.mxu2 %v56_v14 }
  0x19   :  { %676 = vmatmul.msk.f32.vlgmr.msra.gmra.mxu2 %vm78_vm0, %v50_v18 }
  0x1e   :  { %667 = vmatmul.msk.f32.gmra.mxu0 %vm78_vm0, %v41_v19 }
  0x1f   :  { %683 = vmatmul.msk.f32.gmra.mxu1 %vm78_vm0, %v41_v19  ;;  %692 = vmatmul.msk.f32.gmra.mxu3 %vm78_vm0, %v50_v18  ;;  %v1066_v19 = vperm.slane %v72_v34, 0 }
  0x21   :  { %677 = vmatmul.msk.f32.gmra.mxu2 %vm78_vm0, %v51_v20 }
  0x26   :  { %668 = vmatmul.msk.f32.gmra.mxu0 %vm78_vm0, %v42_v21 }
  0x27   :  { %684 = vmatmul.msk.f32.gmra.mxu1 %vm78_vm0, %v42_v21  ;;  %693 = vmatmul.msk.f32.gmra.mxu3 %vm78_vm0, %v51_v20 }
  0x29   :  { %678 = vmatmul.msk.f32.gmra.mxu2 %vm78_vm0, %v52_v22 }
  0x2e   :  { %669 = vmatmul.msk.f32.gmra.mxu0 %vm78_vm0, %v43_v23 }
  0x2f   :  { %685 = vmatmul.msk.f32.gmra.mxu1 %vm78_vm0, %v43_v23  ;;  %694 = vmatmul.msk.f32.gmra.mxu3 %vm78_vm0, %v52_v22 }
  0x31   :  { %679 = vmatmul.msk.f32.gmra.mxu2 %vm78_vm0, %v53_v24 }
  0x36   :  { %670 = vmatmul.msk.f32.gmra.mxu0 %vm78_vm0, %v44_v25 }
  0x37   :  { %686 = vmatmul.msk.f32.gmra.mxu1 %vm78_vm0, %v44_v25  ;;  %695 = vmatmul.msk.f32.gmra.mxu3 %vm78_vm0, %v53_v24 }
  0x39   :  { %680 = vmatmul.msk.f32.gmra.mxu2 %vm78_vm0, %v54_v26 }
  0x3e   :  { %671 = vmatmul.msk.f32.gmra.mxu0 %vm78_vm0, %v45_v27 }
  0x3f   :  { %687 = vmatmul.msk.f32.gmra.mxu1 %vm78_vm0, %v45_v27  ;;  %696 = vmatmul.msk.f32.gmra.mxu3 %vm78_vm0, %v54_v26 }
  0x41   :  { %681 = vmatmul.msk.f32.gmra.mxu2 %vm78_vm0, %v55_v28 }
  0x46   :  { %672 = vmatmul.msk.f32.gmra.mxu0 %vm78_vm0, %v46_v29 }
  0x47   :  { %688 = vmatmul.msk.f32.gmra.mxu1 %vm78_vm0, %v46_v29  ;;  %697 = vmatmul.msk.f32.gmra.mxu3 %vm78_vm0, %v55_v28 }
  0x4e   :  { %673 = vmatmul.msk.f32.gmra.mxu0 %vm78_vm0, %v47_v30 }
  0x4f   :  { %689 = vmatmul.msk.f32.gmra.mxu1 %vm78_vm0, %v47_v30 }
  0x56   :  { %674 = vmatmul.msk.f32.gmra.mxu0 %vm78_vm0, %v48_v31 }
  0x57   :  { %690 = vmatmul.msk.f32.gmra.mxu1 %vm78_vm0, %v48_v31 }
  0x5e   :  { %675 = vmatmul.msk.f32.gmra.mxu0 %vm78_vm0, %v49_v17 }
  0x93   :  { %v1024_v32 = vpop.f32.mrf.mxu0 }
  0x94   :  { %v209_v33 = vpop.f32.mrf.mxu1  ;;  %v1081_v29 = vadd.f32 %v1024_v32, %v1066_v19 }
  0x95   :  { %v210_v51 = vadd.f32 %v209_v33, %v1029_v36 }
  0x97   :  { %v698_v57 = vmul.f32 -1.442695, %v210_v51 }
  0x9a   :  { %v236_v35 = vpop.f32.mrf.mxu3 }
  0x9b   :  { %v1031_v37 = vpop.f32.mrf.mxu0  ;;  %v237_v39 = vadd.f32 %v236_v35, %v1029_v36 }
  0x9c   :  { %v212_v38 = vpop.f32.mrf.mxu1  ;;  %v1037_v46 = vpop.f32.mrf.mxu2  ;;  %v1088_v33 = vadd.f32 %v1031_v37, %v1066_v19 }
  0x9d   :  { %v707_v40 = vmul.f32 -1.442695, %v237_v39  ;;  %v213_v53 = vadd.f32 %v212_v38, %v1029_v36  ;;  %v1092_v35 = vadd.f32 %v1037_v46, %v1066_v19 }
  0x9f   :  { %735 = vpow2.f32 %v707_v40  ;;  %v699_v59 = vmul.f32 -1.442695, %v213_v53 }
  0xa2   :  { %v239_v41 = vpop.f32.mrf.mxu3 }
  0xa3   :  { %v240_v42 = vadd.f32 %v239_v41, %v1029_v36  ;;  %v1035_v43 = vpop.f32.mrf.mxu0 }
  0xa4   :  { %1605 = vst [vmem:[#allocation8_spill] sm:$0xff] %v1035_v43  ;;  %v215_v44 = vpop.f32.mrf.mxu1  ;;  %v177_v58 = vpop.f32.mrf.mxu2 }
  0xa5   :  { %v708_v45 = vmul.f32 -1.442695, %v240_v42  ;;  %v736_v48 = vpop.eup %735  ;;  %v216_v62 = vadd.f32 %v215_v44, %v1029_v36  ;;  %v1098_v40 = vadd.f32 %v177_v58, %v1066_v19 }
  0xa6   :  { %v1044_v55 = vadd.f32 1.0, %v736_v48 }
  0xa7   :  { %737 = vpow2.f32 %v708_v45  ;;  %v700_v4 = vmul.f32 -1.442695, %v216_v62 }
  0xa8   :  { %v465_v31 = vand.u32 2147483647, %v1044_v55  ;;  %vm461_vm1 = vweird.f32 %v1044_v55  ;;  %v467_v46 = vand.u32 2147483648, %v1044_v55 }
  0xaa   :  { %v242_v47 = vpop.f32.mrf.mxu3  ;;  %vm1110_vm2 = vcmp.eq.f32.partialorder %v465_v31, 8.507059e+37 }
  0xab   :  { %v243_v49 = vadd.f32 %v242_v47, %v1029_v36  ;;  %v1040_v50 = vpop.f32.mrf.mxu0 }
  0xac   :  { %v218_v52 = vpop.f32.mrf.mxu1  ;;  %v180_v10 = vpop.f32.mrf.mxu2 }
  0xad   :  { %v709_v54 = vmul.f32 -1.442695, %v243_v49  ;;  %v738_v56 = vpop.eup %737  ;;  %v219_v6 = vadd.f32 %v218_v52, %v1029_v36 }
  0xae   :  { %v1047_v60 = vadd.f32 1.0, %v738_v56 }
  0xaf   :  { %739 = vpow2.f32 %v709_v54  ;;  %v701_v16 = vmul.f32 -1.442695, %v219_v6 }
  0xb0   :  { %741 = vrcp.f32 %v1044_v55  ;;  %v480_v52 = vand.u32 2147483647, %v1047_v60  ;;  %vm476_vm4 = vweird.f32 %v1047_v60 }
  0xb1   :  { %743 = vpow2.f32 %v698_v57 }
  0xb2   :  { %v245_v61 = vpop.f32.mrf.mxu3  ;;  %745 = vpow2.f32 %v699_v59  ;;  %vm1139_vm5 = vcmp.eq.f32.partialorder %v480_v52, 8.507059e+37 }
  0xb3   :  { %v246_v63 = vadd.f32 %v245_v61, %v1029_v36  ;;  %v1051_v0 = vpop.f32.mrf.mxu0  ;;  %747 = vrcp.f32 %v1047_v60 }
  0xb4   :  { %v221_v1 = vpop.f32.mrf.mxu1  ;;  %v183_v45 = vpop.f32.mrf.mxu2 }
  0xb5   :  { %v710_v2 = vmul.f32 -1.442695, %v246_v63  ;;  %v740_v3 = vpop.eup %739  ;;  %v222_v20 = vadd.f32 %v221_v1, %v1029_v36  ;;  %v1127_v1 = vadd.f32 %v180_v10, %v1066_v19 }
  0xb6   :  { %v1054_v5 = vpop.eup %741  ;;  %v1057_v7 = vadd.f32 1.0, %v740_v3  ;;  %v468_v3 = vor.u32 1.1754944e-38, %v467_v46 }
  0xb7   :  { %749 = vpow2.f32 %v710_v2  ;;  %v744_v8 = vpop.eup %743  ;;  %v457_v14 = vmul.f32 %v1054_v5, %v1044_v55  ;;  %v702_v30 = vmul.f32 -1.442695, %v222_v20  ;;  %vm462_vm3 = vweird.f32 %v1054_v5 }
  0xb8   :  { %v746_v11 = vpop.eup %745  ;;  %751 = vpow2.f32 %v700_v4  ;;  %v1070_v22 = vadd.f32 1.0, %v744_v8  ;;  %v482_v2 = vand.u32 2147483648, %v1047_v60  ;;  %v497_v6 = vand.u32 2147483648, %v1057_v7  ;;  %vm1147_vm6 = vmor %vm461_vm1, %vm462_vm3 }
  0xb9   :  { %v1064_v15 = vpop.eup %747  ;;  %753 = vrcp.f32 %v1057_v7  ;;  %v458_v26 = vsub.f32 1.0, %v457_v14  ;;  %v1077_v27 = vadd.f32 1.0, %v746_v11  ;;  %vm491_vm8 = vweird.f32 %v1057_v7 }
  0xba   :  { %v248_v9 = vpop.f32.mrf.mxu3  ;;  %v472_v25 = vmul.f32 %v1064_v15, %v1047_v60  ;;  %vm477_vm7 = vweird.f32 %v1064_v15  ;;  %v495_v55 = vand.u32 2147483647, %v1057_v7 }
  0xbb   :  { %v249_v12 = vadd.f32 %v248_v9, %v1029_v36  ;;  %v1060_v13 = vpop.f32.mrf.mxu0  ;;  %v459_v42 = vmul.f32 %v1054_v5, %v458_v26  ;;  %v483_v26 = vor.u32 1.1754944e-38, %v482_v2  ;;  %vm1175_vm9 = vmor %vm476_vm4, %vm477_vm7 }
  0xbc   :  { %v224_v17 = vpop.f32.mrf.mxu1  ;;  %v473_v41 = vsub.f32 1.0, %v472_v25  ;;  %v1158_v25 = vadd.f32 %v183_v45, %v1066_v19  ;;  %vm1197_vm10 = vcmp.eq.f32.partialorder %v495_v55, 8.507059e+37 }
  0xbd   :  { %v750_v18 = vpop.eup %749  ;;  %v711_v21 = vmul.f32 -1.442695, %v249_v12  ;;  %v225_v24 = vadd.f32 %v224_v17, %v1029_v36  ;;  %v460_v62 = vadd.f32 %v1054_v5, %v459_v42 }
  0xbe   :  { %v1072_v23 = vadd.f32 1.0, %v750_v18  ;;  %v752_v28 = vpop.eup %751  ;;  %v474_v61 = vmul.f32 %v1064_v15, %v473_v41 }
  0xbf   :  { %755 = vpow2.f32 %v711_v21  ;;  %v703_v34 = vmul.f32 -1.442695, %v225_v24  ;;  %v1094_v39 = vpop.eup %753  ;;  %v1102_v37 = vadd.f32 1.0, %v752_v28  ;;  %v464_v20 = vsel %vm1147_vm6, %v1054_v5, %v460_v62 }
  0xc0   :  { %757 = vpow2.f32 %v701_v16  ;;  %v487_v57 = vmul.f32 %v1094_v39, %v1057_v7  ;;  %v475_v18 = vadd.f32 %v1064_v15, %v474_v61  ;;  %v1181_v45 = vsel %vm1110_vm2, %v468_v3, %v464_v20 }
  0xc1   :  { %759 = vrcp.f32 %v1072_v23  ;;  %v510_v53 = vand.u32 2147483647, %v1072_v23  ;;  %v1203_v61 = vadd.f32 %v1060_v13, %v1066_v19  ;;  %vm492_vm11 = vweird.f32 %v1094_v39 }
  0xc2   :  { %761 = vrcp.f32 %v1070_v22  ;;  %v251_v38 = vpop.f32.mrf.mxu3  ;;  %v488_v10 = vsub.f32 1.0, %v487_v57  ;;  %v479_v60 = vsel %vm1175_vm9, %v1064_v15, %v475_v18  ;;  %v512_v57 = vand.u32 2147483648, %v1072_v23  ;;  %vm1237_vm15 = vmor %vm491_vm8, %vm492_vm11 }
  0xc3   :  { %v252_v32 = vadd.f32 %v251_v38, %v1029_v36  ;;  %763 = vrcp.f32 %v1077_v27  ;;  %v1106_v49 = vpop.f32.mrf.mxu0  ;;  %vm506_vm12 = vweird.f32 %v1072_v23  ;;  %vm1227_vm13 = vcmp.eq.f32.partialorder %v510_v53, 8.507059e+37 }
  0xc4   :  { %v227_v44 = vpop.f32.mrf.mxu1  ;;  %765 = vpow2.f32 %v702_v30  ;;  %v489_v42 = vmul.f32 %v1094_v39, %v488_v10  ;;  %v1225_v10 = vadd.f32 %v1106_v49, %v1066_v19 }
  0xc5   :  { %v756_v47 = vpop.eup %755  ;;  %v712_v48 = vmul.f32 -1.442695, %v252_v32  ;;  %v228_v51 = vadd.f32 %v227_v44, %v1029_v36  ;;  %767 = vpow2.f32 %v703_v34  ;;  %v1164_v34 = vor.u32 1.1754944e-38, %v497_v6  ;;  %v186_v32 = vpop.f32.mrf.mxu2 }
  0xc6   :  { %v758_v54 = vpop.eup %757  ;;  %v1114_v56 = vadd.f32 1.0, %v756_v47  ;;  %v490_v3 = vadd.f32 %v1094_v39, %v489_v42  ;;  %v484_v6 = vsel %vm1139_vm5, %v483_v26, %v479_v60 }
  0xc7   :  { %v1119_v58 = vpop.eup %759  ;;  %769 = vpow2.f32 %v712_v48  ;;  %v704_v59 = vmul.f32 -1.442695, %v228_v51  ;;  %v1130_v4 = vadd.f32 1.0, %v758_v54  ;;  %v1242_v49 = vmul.f32 %v484_v6, %v1092_v35 }
  0xc8   :  { %v1123_v63 = vpop.eup %761  ;;  %771 = vrcp.f32 %v1102_v37  ;;  %v502_v11 = vmul.f32 %v1119_v58, %v1072_v23  ;;  %vm507_vm14 = vweird.f32 %v1119_v58  ;;  %v494_v7 = vsel %vm1237_vm15, %v1094_v39, %v490_v3 }
  0xc9   :  { %773 = vrcp.f32 %v1114_v56  ;;  %v1135_v8 = vpop.eup %763  ;;  %v525_v42 = vand.u32 2147483647, %v1114_v56  ;;  %v527_v44 = vand.u32 2147483648, %v1114_v56  ;;  %vm1268_vm0 = vmor %vm506_vm12, %vm507_vm14  ;;  %v499_v53 = vsel %vm1197_vm10, %v1164_v34, %v494_v7 }
  0xca   :  { %775 = vpow2.f32 %v704_v59  ;;  %v254_v9 = vpop.f32.mrf.mxu3  ;;  %v766_v16 = vpop.eup %765  ;;  %v503_v41 = vsub.f32 1.0, %v502_v11  ;;  %v1219_v11 = vadd.f32 %v186_v32, %v1066_v19  ;;  %vm521_vm1 = vweird.f32 %v1114_v56 }
  0xcb   :  { %v255_v17 = vadd.f32 %v254_v9, %v1029_v36  ;;  %v768_v21 = vpop.eup %767  ;;  %777 = vrcp.f32 %v1130_v4  ;;  %v1185_v47 = vadd.f32 1.0, %v766_v16  ;;  %v1187_v48 = vpop.f32.mrf.mxu0  ;;  %v513_v16 = vor.u32 1.1754944e-38, %v512_v57 }
  0xcc   :  { %v230_v24 = vpop.f32.mrf.mxu1  ;;  %v1192_v54 = vadd.f32 1.0, %v768_v21  ;;  %v504_v2 = vmul.f32 %v1119_v58, %v503_v41  ;;  %vm1297_vm2 = vcmp.eq.f32.partialorder %v525_v42, 8.507059e+37 }
  0xcd   :  { %v770_v28 = vpop.eup %769  ;;  %v713_v30 = vmul.f32 -1.442695, %v255_v17  ;;  %v231_v31 = vadd.f32 %v230_v24, %v1029_v36  ;;  %v189_v41 = vpop.f32.mrf.mxu2 }
  0xce   :  { %v1166_v38 = vpop.eup %771  ;;  %v1168_v5 = vadd.f32 1.0, %v770_v28  ;;  %v505_v26 = vadd.f32 %v1119_v58, %v504_v2  ;;  %v407_v3 = vand.u32 2147483648, %v1192_v54  ;;  %v1288_v6 = vadd.f32 %v189_v41, %v1066_v19 }
  0xcf   :  { %v1183_v46 = vpop.eup %773  ;;  %779 = vpow2.f32 %v713_v30  ;;  %v705_v51 = vmul.f32 -1.442695, %v231_v31 }
  0xd0   :  { %v776_v52 = vpop.eup %775  ;;  %781 = vrcp.f32 %v1168_v5  ;;  %v517_v62 = vmul.f32 %v1183_v46, %v1114_v56  ;;  %v509_v23 = vsel %vm1268_vm0, %v1119_v58, %v505_v26  ;;  %v540_v34 = vand.u32 2147483647, %v1168_v5 }
  0xd1   :  { %783 = vpow2.f32 %v705_v51  ;;  %v1213_v9 = vpop.eup %777  ;;  %v1216_v13 = vadd.f32 1.0, %v776_v52  ;;  %v542_v59 = vand.u32 2147483648, %v1168_v5  ;;  %v528_v58 = vor.u32 1.1754944e-38, %v527_v44 }
  0xd2   :  { %785 = vrcp.f32 %v1185_v47  ;;  %v1277_v57 = vmul.f32 %v1213_v9, %v1130_v4  ;;  %v514_v26 = vsel %vm1227_vm13, %v513_v16, %v509_v23  ;;  %vm522_vm3 = vweird.f32 %v1183_v46 }
  0xd3   :  { %787 = vrcp.f32 %v1192_v54  ;;  %v168_v39 = vpop.f32.mrf.mxu0  ;;  %vm536_vm4 = vweird.f32 %v1168_v5  ;;  %vm1320_vm5 = vcmp.eq.f32.partialorder %v540_v34, 8.507059e+37  ;;  %v543_v16 = vor.u32 1.1754944e-38, %v542_v59  ;;  %vm1339_vm7 = vmor %vm521_vm1, %vm522_vm3 }
  0xd4   :  { %v233_v14 = vpop.f32.mrf.mxu1  ;;  %789 = vrcp.f32 %v1216_v13  ;;  %v1329_v52 = vmul.f32 %v514_v26, %v1127_v1  ;;  %vm416_vm14 = vweird.f32 %v1216_v13  ;;  %vm401_vm1 = vweird.f32 %v1192_v54 }
  0xd5   :  { %v780_v17 = vpop.eup %779  ;;  %v234_v18 = vadd.f32 %v233_v14, %v1029_v36  ;;  %v518_v36 = vsub.f32 1.0, %v517_v62  ;;  %v1295_v14 = vadd.f32 %v1187_v48, %v1066_v19 }
  0xd6   :  { %v1245_v24 = vpop.eup %781  ;;  %v1247_v55 = vadd.f32 1.0, %v780_v17 }
  0xd7   :  { %v784_v28 = vpop.eup %783  ;;  %v706_v30 = vmul.f32 -1.442695, %v234_v18  ;;  %v532_v35 = vmul.f32 %v1245_v24, %v1168_v5  ;;  %v519_v2 = vmul.f32 %v1183_v46, %v518_v36  ;;  %v1302_v18 = vmul.f32 %v499_v53, %v1098_v40 }
  0xd8   :  { %791 = vrcp.f32 %v1247_v55  ;;  %v1258_v32 = vadd.f32 1.0, %v784_v28  ;;  %v1262_v51 = vpop.eup %785  ;;  %vm537_vm6 = vweird.f32 %v1245_v24  ;;  %v557_v1 = vand.u32 2147483648, %v1247_v55 }
  0xd9   :  { %793 = vpow2.f32 %v706_v30  ;;  %v533_v60 = vsub.f32 1.0, %v532_v35  ;;  %v1279_v62 = vpop.eup %787  ;;  %v520_v30 = vadd.f32 %v1183_v46, %v519_v2  ;;  %v1314_v35 = vor.u32 1.1754944e-38, %v407_v3  ;;  %vm1358_vm9 = vmor %vm536_vm4, %vm537_vm6 }
  0xda   :  { %795 = vrcp.f32 %v1258_v32  ;;  %v1304_v20 = vpop.eup %789  ;;  %v397_v7 = vmul.f32 %v1279_v62, %v1192_v54  ;;  %v382_v40 = vmul.f32 %v1262_v51, %v1185_v47  ;;  %v422_v2 = vand.u32 2147483648, %v1216_v13 }
  0xdb   :  { %v534_v36 = vmul.f32 %v1245_v24, %v533_v60  ;;  %v524_v26 = vsel %vm1339_vm7, %v1183_v46, %v520_v30  ;;  %v555_v56 = vand.u32 2147483647, %v1247_v55  ;;  %v412_v15 = vmul.f32 %v1304_v20, %v1216_v13 }
  0xdc   :  { %v398_v59 = vsub.f32 1.0, %v397_v7  ;;  %v1354_v7 = vadd.f32 %v168_v39, %v1066_v19  ;;  %v1362_v46 = vor.u32 1.1754944e-38, %v422_v2  ;;  %v383_v30 = vsub.f32 1.0, %v382_v40 }
  0xdd   :  { %v535_v3 = vadd.f32 %v1245_v24, %v534_v36  ;;  %vm551_vm10 = vweird.f32 %v1247_v55  ;;  %v529_v39 = vsel %vm1297_vm2, %v528_v58, %v524_v26  ;;  %v558_v48 = vor.u32 1.1754944e-38, %v557_v1 }
  0xde   :  { %v792_v28 = vpop.eup %791  ;;  %v437_v2 = vand.u32 2147483648, %v1258_v32  ;;  %vm556_vm12 = vcmp.eq.f32.partialorder %v555_v56, 8.507059e+37  ;;  %v574_v31 = vmul.f32 %v529_v39, %v1158_v25  ;;  %v384_v17 = vmul.f32 %v1262_v51, %v383_v30 }
  0xdf   :  { %v794_v41 = vpop.eup %793  ;;  %v547_v42 = vmul.f32 %v792_v28, %v1247_v55  ;;  %vm552_vm8 = vweird.f32 %v792_v28  ;;  %v539_v21 = vsel %vm1358_vm9, %v1245_v24, %v535_v3  ;;  %vm431_vm13 = vweird.f32 %v1258_v32 }
  0xe0   :  { %v1324_v44 = vpop.eup %795  ;;  %v1326_v60 = vadd.f32 1.0, %v794_v41  ;;  %v171_v41 = vpop.f32.mrf.mxu0  ;;  %vm553_vm11 = vmor %vm551_vm10, %vm552_vm8  ;;  %v544_v24 = vsel %vm1320_vm5, %v543_v16, %v539_v21  ;;  %vm417_vm15 = vweird.f32 %v1304_v20  ;;  %vm402_vm0 = vweird.f32 %v1279_v62 }
  0xe1   :  { %v548_v23 = vsub.f32 1.0, %v547_v42  ;;  %v427_v36 = vmul.f32 %v1324_v44, %v1258_v32  ;;  %v172_v5 = vadd.f32 %v171_v41, %v1066_v19  ;;  %v1402_v16 = vadd.f32 %v1262_v51, %v384_v17 }
  0xe2   :  { %797 = vrcp.f32 %v1326_v60  ;;  %vm387_vm2 = vweird.f32 %v1262_v51  ;;  %v452_v1 = vand.u32 2147483648, %v1326_v60  ;;  %vm446_vm5 = vweird.f32 %v1326_v60 }
  0xe3   :  { %v549_v42 = vmul.f32 %v792_v28, %v548_v23  ;;  %v368_v23 = vsub.f32 1.0, %v1277_v57  ;;  %v428_v53 = vsub.f32 1.0, %v427_v36  ;;  %v413_v57 = vsub.f32 1.0, %v412_v15 }
  0xe4   :  { %v435_v15 = vand.u32 2147483647, %v1258_v32  ;;  %v352_v36 = vmul.f32 %v1166_v38, %v1102_v37  ;;  %vm432_vm6 = vweird.f32 %v1324_v44  ;;  %vm386_vm7 = vweird.f32 %v1185_v47 }
  0xe5   :  { %v550_v34 = vadd.f32 %v792_v28, %v549_v42  ;;  %v399_v42 = vmul.f32 %v1279_v62, %v398_v59  ;;  %v429_v21 = vmul.f32 %v1324_v44, %v428_v53  ;;  %v1406_v53 = vmul.f32 %v1213_v9, %v368_v23 }
  0xe6   :  { %vm1413_vm4 = vcmp.eq.f32.partialorder %v435_v15, 8.507059e+37  ;;  %vm371_vm9 = vweird.f32 %v1130_v4 }
  0xe7   :  { %v554_v40 = vsel %vm553_vm11, %v792_v28, %v550_v34  ;;  %v1390_v28 = vor.u32 1.1754944e-38, %v437_v2  ;;  %v1397_v12 = vadd.f32 %v1279_v62, %v399_v42  ;;  %v430_v41 = vadd.f32 %v1324_v44, %v429_v21 }
  0xe8   :  { %v1374_v55 = vpop.eup %797  ;;  %v559_v43 = vsel %vm556_vm12, %v558_v48, %v554_v40  ;;  %v1387_v48 = vmul.f32 %v1181_v45, %v172_v5  ;;  %v450_v45 = vand.u32 2147483647, %v1326_v60  ;;  %v1632_v34 = vand.u32 2147483647, %v1216_v13 }
  0xe9   :  { %v576_v58 = vmul.f32 %v559_v43, %v1288_v6  ;;  %v442_v3 = vmul.f32 %v1374_v55, %v1326_v60  ;;  %v575_v43 = vmul.f32 %v544_v24, %v1219_v11  ;;  %v414_v6 = vmul.f32 %v1304_v20, %v413_v57 }
  0xea   :  { %v337_v11 = vmul.f32 %v1135_v8, %v1077_v27  ;;  %vm447_vm3 = vweird.f32 %v1374_v55  ;;  %vm1427_vm8 = vcmp.eq.f32.partialorder %v1632_v34, 8.507059e+37  ;;  %v347_v60 = vand.u32 2147483648, %v1077_v27 }
  0xeb   :  { %579 = vmatpush.msrb.mxu2 %v576_v58  ;;  %v443_v25 = vsub.f32 1.0, %v442_v3  ;;  %v415_v23 = vadd.f32 %v1304_v20, %v414_v6  ;;  %v322_v5 = vmul.f32 %v1123_v63, %v1070_v22  ;;  %vm1437_vm10 = vmor %vm446_vm5, %vm447_vm3  ;;  %vm1441_vm11 = vcmp.eq.f32.partialorder %v450_v45, 8.507059e+37 }
  0xec   :  { %v338_v56 = vsub.f32 1.0, %v337_v11  ;;  %vm342_vm12 = vweird.f32 %v1135_v8  ;;  %v345_v42 = vand.u32 2147483647, %v1077_v27  ;;  %vm1456_vm3 = vmor %vm431_vm13, %vm432_vm6  ;;  %v1641_v58 = vand.u32 2147483647, %v1192_v54 }
  0xed   :  { %580 = vmatpush.msrb.mxu2 %v575_v43  ;;  %v444_v59 = vmul.f32 %v1374_v55, %v443_v25  ;;  %v323_v15 = vsub.f32 1.0, %v322_v5  ;;  %vm1474_vm13 = vmor %vm416_vm14, %vm417_vm15  ;;  %vm341_vm6 = vweird.f32 %v1077_v27  ;;  %v617_v43 = vld [vmem:[#allocation2 + $0x78] sm:$0xff]  ;;  %v616_v25 = vld [vmem:[#allocation2 + $0x70] sm:$0xff]  ;;  %v330_v6 = vand.u32 2147483647, %v1070_v22 }
  0xee   :  { %v339_v57 = vmul.f32 %v1135_v8, %v338_v56  ;;  %vm1462_vm5 = vcmp.eq.f32.partialorder %v1641_v58, 8.507059e+37  ;;  %v332_v45 = vand.u32 2147483648, %v1070_v22  ;;  %622 = vmatpush.msrb.mxu3 %v617_v43  ;;  %v419_v11 = vsel %vm1474_vm13, %v1304_v20, %v415_v23  ;;  %vm1498_vm15 = vmor %vm401_vm1, %vm402_vm0  ;;  %v613_v23 = vld [vmem:[#allocation2 + $0x58] sm:$0xff]  ;;  %v610_v58 = vld [vmem:[#allocation2 + $0x40] sm:$0xff] }
  0xef   :  { %581 = vmatpush.msrb.mxu2 %v574_v31  ;;  %v445_v30 = vadd.f32 %v1374_v55, %v444_v59  ;;  %v453_v31 = vor.u32 1.1754944e-38, %v452_v1  ;;  %v324_v13 = vmul.f32 %v1123_v63, %v323_v15  ;;  %vm346_vm14 = vcmp.eq.f32.partialorder %v345_v42, 8.507059e+37  ;;  %v615_v59 = vld [vmem:[#allocation2 + $0x68] sm:$0xff]  ;;  %vm1523_vm1 = vmor %vm386_vm7, %vm387_vm2  ;;  %v577_v43 = vld [vmem:[%s1599_s1] sm:$0xff] }
  0xf0   :  { %v340_v21 = vadd.f32 %v1135_v8, %v339_v57  ;;  %623 = vmatpush.msrb.mxu3 %v616_v25  ;;  %v404_v54 = vsel %vm1498_vm15, %v1279_v62, %v1397_v12  ;;  %v333_v20 = vor.u32 1.1754944e-38, %v332_v45  ;;  %v377_v12 = vand.u32 2147483648, %v1130_v4  ;;  %v611_v42 = vld [vmem:[#allocation2 + $0x48] sm:$0xff]  ;;  %v605_v25 = vld [vmem:[#allocation2 + $0x18] sm:$0xff] }
  0xf1   :  { %582 = vmatpush.msrb.mxu2 %v1329_v52  ;;  %v449_v24 = vsel %vm1437_vm10, %v1374_v55, %v445_v30  ;;  %v353_v52 = vsub.f32 1.0, %v352_v36  ;;  %v434_v55 = vsel %vm1456_vm3, %v1324_v44, %v430_v41  ;;  %vm327_vm10 = vweird.f32 %v1123_v63  ;;  %vm343_vm3 = vmor %vm341_vm6, %vm342_vm12  ;;  %v614_v30 = vld [vmem:[#allocation2 + $0x60] sm:$0xff] }
  0xf2   :  { %v348_v44 = vor.u32 1.1754944e-38, %v347_v60  ;;  %v454_v27 = vsel %vm1441_vm11, %v453_v31, %v449_v24  ;;  %v325_v56 = vadd.f32 %v1123_v63, %v324_v13  ;;  %vm326_vm11 = vweird.f32 %v1070_v22  ;;  %624 = vmatpush.msrb.mxu3 %v615_v59  ;;  %v612_v60 = vld [vmem:[#allocation2 + $0x50] sm:$0xff]  ;;  %v602_v13 = vld [vmem:[#allocation2] sm:$0xff] }
  0xf3   :  { %583 = vmatpush.msrb.mxu2 %v1302_v18  ;;  %v344_v18 = vsel %vm343_vm3, %v1135_v8, %v340_v21  ;;  %v354_v36 = vmul.f32 %v1166_v38, %v353_v52  ;;  %v439_v8 = vsel %vm1413_vm4, %v1390_v28, %v434_v55  ;;  %vm328_vm0 = vmor %vm326_vm11, %vm327_vm10  ;;  %v569_v22 = vmul.f32 %v454_v27, %v1354_v7  ;;  %v607_v21 = vld [vmem:[#allocation2 + $0x28] sm:$0xff] }
  0xf4   :  { %v349_v41 = vsel %vm346_vm14, %v348_v44, %v344_v18  ;;  %v329_v62 = vsel %vm328_vm0, %v1123_v63, %v325_v56  ;;  %vm331_vm4 = vcmp.eq.f32.partialorder %v330_v6, 8.507059e+37  ;;  %v389_v7 = vsel %vm1523_vm1, %v1262_v51, %v1402_v16  ;;  %625 = vmatpush.msrb.mxu3 %v614_v30  ;;  %v603_v44 = vld [vmem:[#allocation2 + $0x8] sm:$0xff] }
  0xf5   :  { %584 = vmatpush.msrb.mxu2 %v1242_v49  ;;  %v1513_v49 = vmul.f32 %v349_v41, %v1088_v33  ;;  %v370_v33 = vadd.f32 %v1213_v9, %v1406_v53  ;;  %v334_v26 = vsel %vm331_vm4, %v333_v20, %v329_v62  ;;  %v568_v53 = vmul.f32 %v439_v8, %v1295_v14  ;;  %v578_v6 = vld [vmem:[%s1599_s1 + $0x8] sm:$0xff]  ;;  %s653_s1 = sshll.u32 %s1604_s6, 4  ;;  %s654_s1 = int_to_ptr.hbm [resolvable:$true] %s653_s1 }
  0xf6   :  { %v355_v63 = vadd.f32 %v1166_v38, %v354_v36  ;;  %vm357_vm2 = vweird.f32 %v1166_v38  ;;  %v561_v34 = vmul.f32 %v334_v26, %v1081_v29  ;;  %v1650_v51 = vand.u32 2147483647, %v1185_v47  ;;  %626 = vmatpush.msrb.mxu3 %v613_v23 }
  0xf7   :  { %585 = vmatpush.msrb.mxu2 %v1387_v48  ;;  %v424_v48 = vsel %vm1427_vm8, %v1362_v46, %v419_v11  ;;  %v409_v46 = vsel %vm1462_vm5, %v1314_v35, %v404_v54  ;;  %v1651_v16 = vand.u32 2147483648, %v1185_v47  ;;  %vm1652_vm8 = vweird.f32 %v1213_v9  ;;  %v734_v11 = vld [vmem:[%s1603_s5] ss:$0 sm:$0xff] }
  0xf8   :  { %vm391_vm7 = vcmp.eq.f32.partialorder %v1650_v51, 8.507059e+37  ;;  %vm1553_vm12 = vmor %vm371_vm9, %vm1652_vm8  ;;  %v362_v29 = vand.u32 2147483648, %v1102_v37  ;;  %v567_v35 = vmul.f32 %v424_v48, %v1225_v10  ;;  %vm356_vm5 = vweird.f32 %v1102_v37  ;;  %627 = vmatpush.msrb.mxu3 %v612_v60 }
  0xf9   :  { %586 = vmatpush.msrb.mxu2 %v569_v22  ;;  %v393_v39 = vor.u32 1.1754944e-38, %v1651_v16  ;;  %v374_v5 = vsel %vm1553_vm12, %v1213_v9, %v370_v33  ;;  %v360_v47 = vand.u32 2147483647, %v1102_v37  ;;  %v378_v40 = vor.u32 1.1754944e-38, %v377_v12  ;;  %vm1566_vm9 = vmor %vm356_vm5, %vm357_vm2 }
  0xfa   :  { %v157_v10 = vadd.f32 %v1051_v0, %v1066_v19  ;;  %v566_v9 = vmul.f32 %v409_v46, %v1203_v61  ;;  %v1657_v24 = vand.u32 2147483647, %v1130_v4  ;;  %v359_v37 = vsel %vm1566_vm9, %v1166_v38, %v355_v63  ;;  %628 = vmatpush.msrb.mxu3 %v611_v42  ;;  %v609_v61 = vld [vmem:[#allocation2 + $0x38] sm:$0xff]  ;;  %v1658_v4 = vld [vmem:[#allocation8_spill] sm:$0xff] }
  0xfb   :  { %587 = vmatpush.msrb.mxu2 %v568_v53  ;;  %v394_v2 = vsel %vm391_vm7, %v393_v39, %v389_v7  ;;  %v363_v17 = vor.u32 1.1754944e-38, %v362_v29  ;;  %v154_v3 = vadd.f32 %v1040_v50, %v1066_v19  ;;  %vm361_vm6 = vcmp.eq.f32.partialorder %v360_v47, 8.507059e+37  ;;  %v608_v38 = vld [vmem:[#allocation2 + $0x30] sm:$0xff]  ;;  %v606_v50 = vld [vmem:[#allocation2 + $0x20] sm:$0xff] }
  0xfc   :  { %vm376_vm13 = vcmp.eq.f32.partialorder %v1657_v24, 8.507059e+37  ;;  %v565_v52 = vmul.f32 %v394_v2, %v157_v10  ;;  %v151_v15 = vadd.f32 %v1658_v4, %v1066_v19  ;;  %629 = vmatpush.msrb.mxu3 %v610_v58  ;;  %v604_v19 = vld [vmem:[#allocation2 + $0x10] sm:$0xff] }
  0xfd   :  { %588 = vmatpush.msrb.mxu2 %v567_v35  ;;  %v379_v31 = vsel %vm376_vm13, %v378_v40, %v374_v5  ;;  %v364_v0 = vsel %vm361_vm6, %v363_v17, %v359_v37 }
  0xfe   :  { %v564_v55 = vmul.f32 %v379_v31, %v154_v3  ;;  %v563_v32 = vmul.f32 %v364_v0, %v151_v15  ;;  %630 = vmatpush.msrb.mxu3 %v609_v61 }
  0xff   :  { %589 = vmatpush.msrb.mxu2 %v566_v9 }
 0x100   :  { %631 = vmatpush.msrb.mxu3 %v608_v38 }
 0x101   :  { %590 = vmatpush.msrb.mxu2 %v565_v52 }
 0x102   :  { %632 = vmatpush.msrb.mxu3 %v607_v21 }
 0x103   :  { %591 = vmatpush.msrb.mxu2 %v564_v55 }
 0x104   :  { %633 = vmatpush.msrb.mxu3 %v606_v50 }
 0x105   :  { %592 = vmatpush.msrb.mxu2 %v563_v32 }
 0x106   :  { %634 = vmatpush.msrb.mxu3 %v605_v25 }
 0x107   :  { %593 = vmatpush.msrb.mxu2 %v1513_v49 }
 0x108   :  { %635 = vmatpush.msrb.mxu3 %v604_v19 }
 0x109   :  { %594 = vmatpush.msrb.mxu2 %v561_v34 }
 0x10a   :  { %595 = vmatmul.f32.vlgmr.msrb.gmra.mxu2 %v577_v43  ;;  %636 = vmatpush.msrb.mxu3 %v603_v44 }
 0x10c   :  { %637 = vmatpush.msrb.mxu3 %v602_v13 }
 0x112   :  { %598 = vmatmul.f32.gmra.mxu2 %v578_v6 }
 0x18d   :  { %v596_v45 = vpop.f32.mrf.mxu2 }
 0x18e   :  { %638 = vmatmul.f32.vlgmr.msrb.gmra.mxu3 %v596_v45 }
 0x195   :  { %v599_v27 = vpop.f32.mrf.mxu2 }
 0x196   :  { %641 = vmatmul.f32.gmra.mxu3 %v599_v27 }
 0x211   :  { %v639_v18 = vpop.f32.mrf.mxu3 }
 0x212   :  { %v640_v59 = vadd.f32 %v734_v11, %v639_v18 }
 0x214   :  { %645 = vst [vmem:[#allocation5] sm:$0xff] %v640_v59 }
 0x219   :  { %v642_v1 = vpop.f32.mrf.mxu3 }
 0x21a   :  { %v643_v36 = vadd.f32 %v734_v11, %v642_v1 }
 0x21c   :  { %646 = vst [vmem:[#allocation5 + $0x8] sm:$0xff] %v643_v36 }
 0x21d   :  { %659 = dma.vmem_to_hbm [thread:$0]  %s652_s28, 256, %s654_s1, [#allocation4], %s852_s26, %s852_s26, %s853_s27  }
 0x21e   :  { %849 = dma.done.wait [#allocation4], 256  }
 0x21f   :  { %850 = vsyncadd [#allocation4], 4294967040 }
 0x220   :  { %664 = vsyncpa [#allocation3], 1 }
 0x221   :  { %665 = vsyncpa [#allocation4], 1 }

</bundles_post_ra>
